<compile_context>
chip_gen: v6e
topology: v6e:2x2x1
jax: 0.10.0
libtpu: 0.0.40
codegen_flags: <defaults>
</compile_context>

<pallas_src>
import math

import jax
import jax.numpy as jnp
from jax.experimental import pallas as pl
from jax.experimental.pallas import tpu as pltpu


_LANE = 512            # lane (last) dim: large multiple of 128 -> unmasked stores
_MAX_ROW_BLOCK = 1024  # 1024 x 512 x 4B = 2 MiB per block


def _identity_kernel(x_ref, y_ref):
    # Plain full-vreg load + store; no in-kernel reshapes/transposes.
    y_ref[...] = x_ref[...]


def _sublane_multiple(dtype) -> int:
    itemsize = jnp.dtype(dtype).itemsize
    return {4: 8, 2: 16, 1: 32}.get(itemsize, 8)


def _round_up(x: int, m: int) -> int:
    return ((x + m - 1) // m) * m


def identity_forward(x, logpx=None):
    """Pallas port of IdentityTransform.forward."""
    orig_shape = x.shape
    n = math.prod(orig_shape)

    # Flatten to a lane-dense 2-D layout: (rows, _LANE), rows a multiple of the
    # dtype's sublane tile, blocked into multi-MiB tiles.
    sub = _sublane_multiple(x.dtype)
    rows = _round_up(pl.cdiv(n, _LANE), sub)
    row_block = min(_MAX_ROW_BLOCK, rows)
    rows = _round_up(rows, row_block)
    padded_n = rows * _LANE

    x_flat = x.reshape(-1)
    if padded_n != n:
        x_flat = jnp.pad(x_flat, (0, padded_n - n))
    x2d = x_flat.reshape(rows, _LANE)

    itemsize = jnp.dtype(x.dtype).itemsize
    cost = pl.CostEstimate(
        flops=0, transcendentals=0, bytes_accessed=2 * padded_n * itemsize)

    y2d = pl.pallas_call(
        _identity_kernel,
        out_shape=jax.ShapeDtypeStruct((rows, _LANE), x.dtype),
        grid_spec=pltpu.PrefetchScalarGridSpec(
            num_scalar_prefetch=0,
            grid=(rows // row_block,),
            in_specs=[pl.BlockSpec((row_block, _LANE), lambda i: (i, 0))],
            out_specs=pl.BlockSpec((row_block, _LANE), lambda i: (i, 0)),
        ),
        compiler_params=pltpu.CompilerParams(
            dimension_semantics=("parallel",)),
        cost_estimate=cost,
        # Identity copy: in-place aliasing can never corrupt the result, and it
        # saves an HBM allocation when the input buffer is donatable.
        input_output_aliases={0: 0},
    )(x2d)

    y = y2d.reshape(-1)[:n].reshape(orig_shape)

    if logpx is None:
        return y
    # Identity transform: log|det dJ| = 0, so logpx passes through unchanged.
    return y, logpx


if __name__ == "__main__":
    key = jax.random.PRNGKey(0)
    B, C, H, W = 2, 4, 16, 16

    kx, kl = jax.random.split(key)
    x = jax.random.normal(kx, (B, C, H, W), dtype=jnp.float32)
    logpx = jax.random.normal(kl, (B, 1), dtype=jnp.float32)

    # Run kernel with and without logpx (matching the PyTorch forward signature).
    y = identity_forward(x)
    y2, logpz = identity_forward(x, logpx)
    jax.block_until_ready((y, y2, logpz))

    # Reference check: identity in, identity out.
    assert y.shape == x.shape and y.dtype == x.dtype
    assert jnp.array_equal(y, x)
    assert jnp.array_equal(y2, x)
    assert jnp.array_equal(logpz, logpx)

    print("KERNEL_OK")
</pallas_src>

<mosaic_0001>
module attributes {stable_mosaic.version = 11 : i64} {
  func.func @_identity_kernel(%arg0: i32, %arg1: memref<8x512xf32, #tpu.memory_space<vmem>>, %arg2: memref<8x512xf32, #tpu.memory_space<vmem>>) attributes {dimension_semantics = [#tpu.dimension_semantics<parallel>], iteration_bounds = array<i64: 1>, scalar_prefetch = 0 : i64, scratch_operands = 0 : i64, tpu.core_type = #tpu.core_type<tc>, window_params = [{transform_indices = @transform_0, window_bounds = array<i64: 8, 512>}, {transform_indices = @transform_1, window_bounds = array<i64: 8, 512>}]} {
    %c0 = arith.constant 0 : index
    %c0_0 = arith.constant 0 : index
    %0 = vector.load %arg1[%c0, %c0_0] : memref<8x512xf32, #tpu.memory_space<vmem>>, vector<8x512xf32>
    %c0_1 = arith.constant 0 : index
    %c0_2 = arith.constant 0 : index
    %1 = vector.load %arg2[%c0_1, %c0_2] : memref<8x512xf32, #tpu.memory_space<vmem>>, vector<8x512xf32>
    tpu.vector_store %arg2[%c0_1, %c0_2], %0 {strides = array<i32>} : memref<8x512xf32, #tpu.memory_space<vmem>>, vector<8x512xf32>,
    return
  }
  func.func @transform_0(%arg0: i32) -> (i32, i32) {
    %c0_i32 = arith.constant 0 : i32
    %c0_i32_0 = arith.constant 0 : i32
    return %arg0, %c0_i32 : i32, i32
  }
  func.func @transform_1(%arg0: i32) -> (i32, i32) {
    %c0_i32 = arith.constant 0 : i32
    %c0_i32_0 = arith.constant 0 : i32
    return %arg0, %c0_i32 : i32, i32
  }
}

</mosaic_0001>

<bundles_post_ra>
// kernel: tpu_custom_call.1
= control target key start
LH: loop header
LB: loop body
LE: loop exit
PB: predicated region body
PF: predicated region fallthrough
CT: control target
= control target key end

     0   :  { %6 = vsyncpa [#allocation3], 0  ;;  %s108_s0 = inlined_call_operand.hbm [shape: f32[8,512], index: 0, kind: input, shape index: {}, may-alias: {0,1}]   ;;  %s109_s1 = inlined_call_operand.hbm [shape: f32[8,512], index: 1, kind: output, shape index: {}, may-alias: {0,1}]  }
   0x1   :  { %7 = vsyncpa [#allocation4], 0  ;;  %s90_s6 = smov [#allocation2]  }
   0x2   :  { %s14_s7 = sshll.u32 %s90_s6, 4  ;;  %s15_s7 = int_to_ptr.vmem [resolvable:$true] %s14_s7 }
   0x3   :  { %s54_s8 = scalar_lea.vmem %s15_s7, 512  ;;  %p59_p1 = scmp.lt.s32.totalorder %s15_s7, %s15_s7 }
   0x4   :  { %p55_p0 = scmp.ne.s32.totalorder %s15_s7, %s54_s8  ;;  %p60_p2 = scmp.lt.s32.totalorder %s54_s8, %s54_s8 }
   0x6   :  { %p61_p3 = por %p60_p2, %p59_p1 }
   0x8   :  { %p62_p4 = pnand %p61_p3, %p55_p0 }
   0xa   :  { %65 = shalt.err (!%p62_p4)
}
   0xb   :  { %17 = dma.hbm_to_vmem [thread:$0]  %s108_s0, 512, %s15_s7, [#allocation3]  }
   0xc   :  { %86 = dma.done.wait [#allocation3], 512  }
   0xd   :  { %87 = vsyncadd [#allocation3], 4294966784  ;;  %s91_s11 = smov [#allocation5]   ;;  %v21_v0 = vld [vmem:[#allocation2] sm:$0xff]  ;;  %v22_v1 = vld [vmem:[#allocation2 + $0x8] sm:$0xff] }
   0xe   :  { %s35_s12 = sshll.u32 %s91_s11, 4  ;;  %v23_v2 = vld [vmem:[#allocation2 + $0x10] sm:$0xff]  ;;  %25 = vst [vmem:[#allocation5] sm:$0xff] %v21_v0  ;;  %26 = vst [vmem:[#allocation5 + $0x8] sm:$0xff] %v22_v1  ;;  %v24_v3 = vld [vmem:[#allocation2 + $0x18] sm:$0xff]  ;;  %s36_s12 = int_to_ptr.vmem [resolvable:$true] %s35_s12 }
   0xf   :  { %27 = vst [vmem:[#allocation5 + $0x10] sm:$0xff] %v23_v2  ;;  %28 = vst [vmem:[#allocation5 + $0x18] sm:$0xff] %v24_v3  ;;  %s66_s13 = scalar_lea.vmem %s36_s12, 512  ;;  %p71_p6 = scmp.lt.s32.totalorder %s36_s12, %s36_s12 }
  0x10   :  { %p67_p5 = scmp.ne.s32.totalorder %s36_s12, %s66_s13  ;;  %p72_p7 = scmp.lt.s32.totalorder %s66_s13, %s66_s13 }
  0x12   :  { %p73_p8 = por %p72_p7, %p71_p6 }
  0x14   :  { %p74_p9 = pnand %p73_p8, %p67_p5 }
  0x16   :  { %77 = shalt.err (!%p74_p9)
}
  0x17   :  { %38 = dma.vmem_to_hbm [thread:$0]  %s36_s12, 512, %s109_s1, [#allocation4]  }
  0x18   :  { %88 = dma.done.wait [#allocation4], 512  }
  0x19   :  { %89 = vsyncadd [#allocation4], 4294966784 }
  0x1a   :  { %42 = vsyncpa [#allocation3], 1 }
  0x1b   :  { %43 = vsyncpa [#allocation4], 1 }

</bundles_post_ra>
